<compile_context>
chip_gen: v6e
topology: v6e:2x2x1
jax: 0.10.0
libtpu: 0.0.40
codegen_flags: <defaults>
</compile_context>

<pallas_src>
import functools

import jax
import jax.numpy as jnp
from jax.experimental import pallas as pl
from jax.experimental.pallas import tpu as pltpu

FEATURE_DIM = 32       # feature_dim
HIDDEN_DIM = 128       # fc_v1 output
VF_DIM = 64            # last_layer_dim_vf (public output width)
DEFAULT_TILE_B = 512   # batch tile (multiple of 8 sublanes, MXU-friendly)
BATCH = 8


def _round_up(x, m):
    return (x + m - 1) // m * m


def qnet_kernel(x_ref, w1_ref, b1_ref, w2_ref, b2_ref, out_ref):
    # Layer 1: Linear(feature_dim -> 128) + ReLU.
    # bf16 operands on the MXU, f32 accumulation, f32 epilogue (VPU).
    h = jnp.dot(x_ref[...], w1_ref[...], preferred_element_type=jnp.float32)
    h = jnp.maximum(h + b1_ref[...], 0.0)

    # Layer 2: Linear(128 -> padded vf) + ReLU. Output is lane-dense (128 cols).
    v = jnp.dot(h.astype(w2_ref.dtype), w2_ref[...],
                preferred_element_type=jnp.float32)
    v = jnp.maximum(v + b2_ref[...], 0.0)
    out_ref[...] = v.astype(out_ref.dtype)


@functools.partial(jax.jit, static_argnames=("tile_b",))
def qnet_forward(features, w1, b1, w2, b2, *, tile_b=DEFAULT_TILE_B):
    """features: [B, feature_dim] f32 -> [B, VF_DIM] f32."""
    batch, feat = features.shape
    hidden = w1.shape[1]
    vf = w2.shape[1]

    # --- Lane-dense output: pad vf -> multiple of 128 (zero cols are free on MXU).
    vf_pad = _round_up(vf, 128)
    if vf_pad != vf:
        w2 = jnp.pad(w2, ((0, 0), (0, vf_pad - vf)))
        b2 = jnp.pad(b2, ((0, 0), (0, vf_pad - vf)))

    # --- bf16 matmul operands (f32 accumulate in-kernel); biases stay f32.
    x = features.astype(jnp.bfloat16)
    w1 = w1.astype(jnp.bfloat16)
    w2 = w2.astype(jnp.bfloat16)
    b1 = b1.astype(jnp.float32)
    b2 = b2.astype(jnp.float32)

    # --- Batch tiling: big tiles so DMA pipelines against compute; small
    # batches collapse to a single tile. Pad batch to a tile multiple.
    # NOTE: FEATURE_DIM=32 is left unpadded (equals full array dim, which is
    # legal); padding K to 128 would 4x the activation bytes moved.
    tb = min(tile_b, _round_up(batch, 8))
    pad_b = _round_up(batch, tb)
    if pad_b != batch:
        x = jnp.pad(x, ((0, pad_b - batch), (0, 0)))
    grid = (pad_b // tb,)

    flops = 2 * pad_b * (feat * hidden + hidden * vf_pad)
    bytes_accessed = (pad_b * feat * 2            # bf16 activations in
                      + feat * hidden * 2         # w1 (bf16)
                      + hidden * vf_pad * 2       # w2 (bf16)
                      + (hidden + vf_pad) * 4     # biases (f32)
                      + pad_b * vf_pad * 4)       # f32 output

    out = pl.pallas_call(
        qnet_kernel,
        out_shape=jax.ShapeDtypeStruct((pad_b, vf_pad), jnp.float32),
        grid=grid,
        in_specs=[
            pl.BlockSpec((tb, feat), lambda i: (i, 0)),       # batch tile (pipelined)
            pl.BlockSpec((feat, hidden), lambda i: (0, 0)),   # resident weights
            pl.BlockSpec((1, hidden), lambda i: (0, 0)),
            pl.BlockSpec((hidden, vf_pad), lambda i: (0, 0)),
            pl.BlockSpec((1, vf_pad), lambda i: (0, 0)),
        ],
        out_specs=pl.BlockSpec((tb, vf_pad), lambda i: (i, 0)),
        compiler_params=pltpu.CompilerParams(
            dimension_semantics=("parallel",)),
        cost_estimate=pl.CostEstimate(
            flops=flops, transcendentals=0, bytes_accessed=bytes_accessed),
    )(x, w1, b1, w2, b2)

    # Slice back to the public API: [B, VF_DIM].
    return out[:batch, :vf]


def init_params(key, feature_dim=FEATURE_DIM, hidden=HIDDEN_DIM, vf_dim=VF_DIM):
    """Deterministic init mimicking nn.Linear default (uniform +- 1/sqrt(fan_in))."""
    k1, k2, k3, k4 = jax.random.split(key, 4)
    lim1 = 1.0 / jnp.sqrt(feature_dim)
    lim2 = 1.0 / jnp.sqrt(hidden)
    # Stored as [in_dim, out_dim] (transpose of PyTorch's [out, in]).
    w1 = jax.random.uniform(k1, (feature_dim, hidden), jnp.float32, -lim1, lim1)
    b1 = jax.random.uniform(k2, (1, hidden), jnp.float32, -lim1, lim1)
    w2 = jax.random.uniform(k3, (hidden, vf_dim), jnp.float32, -lim2, lim2)
    b2 = jax.random.uniform(k4, (1, vf_dim), jnp.float32, -lim2, lim2)
    return w1, b1, w2, b2


def qnet_ref(features, w1, b1, w2, b2):
    """Pure-JAX reference with the same bf16-operand / f32-accumulate numerics."""
    h = jnp.dot(features.astype(jnp.bfloat16), w1.astype(jnp.bfloat16),
                preferred_element_type=jnp.float32)
    h = jnp.maximum(h + b1, 0.0)
    v = jnp.dot(h.astype(jnp.bfloat16), w2.astype(jnp.bfloat16),
                preferred_element_type=jnp.float32)
    return jnp.maximum(v + b2, 0.0)


if __name__ == "__main__":
    key = jax.random.PRNGKey(0)
    kx, kp, kx2 = jax.random.split(key, 3)
    w1, b1, w2, b2 = init_params(kp)

    # Small batch (single tile).
    features = jax.random.normal(kx, (BATCH, FEATURE_DIM), jnp.float32)
    out = jax.block_until_ready(qnet_forward(features, w1, b1, w2, b2))
    ref = qnet_ref(features, w1, b1, w2, b2)
    assert out.shape == (BATCH, VF_DIM), out.shape
    assert jnp.allclose(out, ref, atol=1e-3, rtol=1e-3), "mismatch vs reference (small batch)"

    # Larger batch exercising the grid (multiple tiles + batch padding).
    big = 600
    features2 = jax.random.normal(kx2, (big, FEATURE_DIM), jnp.float32)
    out2 = jax.block_until_ready(
        qnet_forward(features2, w1, b1, w2, b2, tile_b=256))
    ref2 = qnet_ref(features2, w1, b1, w2, b2)
    assert out2.shape == (big, VF_DIM), out2.shape
    assert jnp.allclose(out2, ref2, atol=1e-3, rtol=1e-3), "mismatch vs reference (gridded)"

    print("KERNEL_OK")
</pallas_src>

<mosaic_0001>
module attributes {stable_mosaic.version = 11 : i64} {
  func.func @qnet_kernel(%arg0: i32, %arg1: memref<8x32xbf16, #tpu.memory_space<vmem>>, %arg2: memref<32x128xbf16, #tpu.memory_space<vmem>>, %arg3: memref<1x128xf32, #tpu.memory_space<vmem>>, %arg4: memref<128x128xbf16, #tpu.memory_space<vmem>>, %arg5: memref<1x128xf32, #tpu.memory_space<vmem>>, %arg6: memref<8x128xf32, #tpu.memory_space<vmem>>) attributes {dimension_semantics = [#tpu.dimension_semantics<parallel>], iteration_bounds = array<i64: 1>, scalar_prefetch = 0 : i64, scratch_operands = 0 : i64, tpu.core_type = #tpu.core_type<tc>, window_params = [{transform_indices = @transform_0, window_bounds = array<i64: 8, 32>}, {pipeline_mode = #tpu.pipeline_mode<synchronous>, transform_indices = @transform_1, window_bounds = array<i64: 32, 128>}, {pipeline_mode = #tpu.pipeline_mode<synchronous>, transform_indices = @transform_2, window_bounds = array<i64: 1, 128>}, {pipeline_mode = #tpu.pipeline_mode<synchronous>, transform_indices = @transform_3, window_bounds = array<i64: 128, 128>}, {pipeline_mode = #tpu.pipeline_mode<synchronous>, transform_indices = @transform_4, window_bounds = array<i64: 1, 128>}, {transform_indices = @transform_5, window_bounds = array<i64: 8, 128>}]} {
    %c0 = arith.constant 0 : index
    %c0_0 = arith.constant 0 : index
    %0 = vector.load %arg1[%c0, %c0_0] : memref<8x32xbf16, #tpu.memory_space<vmem>>, vector<8x32xbf16>
    %c0_1 = arith.constant 0 : index
    %c0_2 = arith.constant 0 : index
    %1 = vector.load %arg2[%c0_1, %c0_2] : memref<32x128xbf16, #tpu.memory_space<vmem>>, vector<32x128xbf16>
    %cst = arith.constant dense<0.000000e+00> : vector<8x128xf32>
    %2 = tpu.matmul %0, %1, %cst {dimension_numbers = #tpu.dot_dimension_numbers<[1], [0], [0], [1], [0, 0, 1, 1], [], []>} : vector<8x32xbf16>, vector<32x128xbf16>, vector<8x128xf32> -> vector<8x128xf32>
    %c0_3 = arith.constant 0 : index
    %c0_4 = arith.constant 0 : index
    %3 = vector.load %arg3[%c0_3, %c0_4] : memref<1x128xf32, #tpu.memory_space<vmem>>, vector<1x128xf32>
    %4 = vector.broadcast %3 : vector<1x128xf32> to vector<8x128xf32>
    %5 = arith.addf %2, %4 : vector<8x128xf32>
    %cst_5 = arith.constant 0.000000e+00 : f32
    %6 = vector.broadcast %cst_5 : f32 to vector<8x128xf32>
    %7 = arith.maximumf %5, %6 : vector<8x128xf32>
    %8 = arith.truncf %7 : vector<8x128xf32> to vector<8x128xbf16>
    %c0_6 = arith.constant 0 : index
    %c0_7 = arith.constant 0 : index
    %9 = vector.load %arg4[%c0_6, %c0_7] : memref<128x128xbf16, #tpu.memory_space<vmem>>, vector<128x128xbf16>
    %cst_8 = arith.constant dense<0.000000e+00> : vector<8x128xf32>
    %10 = tpu.matmul %8, %9, %cst_8 {dimension_numbers = #tpu.dot_dimension_numbers<[1], [0], [0], [1], [0, 0, 1, 1], [], []>} : vector<8x128xbf16>, vector<128x128xbf16>, vector<8x128xf32> -> vector<8x128xf32>
    %c0_9 = arith.constant 0 : index
    %c0_10 = arith.constant 0 : index
    %11 = vector.load %arg5[%c0_9, %c0_10] : memref<1x128xf32, #tpu.memory_space<vmem>>, vector<1x128xf32>
    %12 = vector.broadcast %11 : vector<1x128xf32> to vector<8x128xf32>
    %13 = arith.addf %10, %12 : vector<8x128xf32>
    %cst_11 = arith.constant 0.000000e+00 : f32
    %14 = vector.broadcast %cst_11 : f32 to vector<8x128xf32>
    %15 = arith.maximumf %13, %14 : vector<8x128xf32>
    %c0_12 = arith.constant 0 : index
    %c0_13 = arith.constant 0 : index
    %16 = vector.load %arg6[%c0_12, %c0_13] : memref<8x128xf32, #tpu.memory_space<vmem>>, vector<8x128xf32>
    tpu.vector_store %arg6[%c0_12, %c0_13], %15 {strides = array<i32>} : memref<8x128xf32, #tpu.memory_space<vmem>>, vector<8x128xf32>,
    return
  }
  func.func @transform_0(%arg0: i32) -> (i32, i32) {
    %c0_i32 = arith.constant 0 : i32
    %c0_i32_0 = arith.constant 0 : i32
    return %arg0, %c0_i32 : i32, i32
  }
  func.func @transform_1(%arg0: i32) -> (i32, i32) {
    %c0_i32 = arith.constant 0 : i32
    %c0_i32_0 = arith.constant 0 : i32
    %c0_i32_1 = arith.constant 0 : i32
    return %c0_i32, %c0_i32_0 : i32, i32
  }
  func.func @transform_2(%arg0: i32) -> (i32, i32) {
    %c0_i32 = arith.constant 0 : i32
    %c0_i32_0 = arith.constant 0 : i32
    %c0_i32_1 = arith.constant 0 : i32
    return %c0_i32, %c0_i32_0 : i32, i32
  }
  func.func @transform_3(%arg0: i32) -> (i32, i32) {
    %c0_i32 = arith.constant 0 : i32
    %c0_i32_0 = arith.constant 0 : i32
    %c0_i32_1 = arith.constant 0 : i32
    return %c0_i32, %c0_i32_0 : i32, i32
  }
  func.func @transform_4(%arg0: i32) -> (i32, i32) {
    %c0_i32 = arith.constant 0 : i32
    %c0_i32_0 = arith.constant 0 : i32
    %c0_i32_1 = arith.constant 0 : i32
    return %c0_i32, %c0_i32_0 : i32, i32
  }
  func.func @transform_5(%arg0: i32) -> (i32, i32) {
    %c0_i32 = arith.constant 0 : i32
    %c0_i32_0 = arith.constant 0 : i32
    return %arg0, %c0_i32 : i32, i32
  }
}

</mosaic_0001>

<bundles_post_ra>
// kernel: qnet_forward.1
= control target key start
LH: loop header
LB: loop body
LE: loop exit
PB: predicated region body
PF: predicated region fallthrough
CT: control target
= control target key end

     0   :  { %v307_v1 = vmov 0.0   ;;  %vm308_vm0 = vmmov 0   ;;  %vm46_vm1 = vcmask 261120   ;;  %s382_s0 = inlined_call_operand.vmem [shape: bf16[8,32], index: 0, kind: input, shape index: {}]   ;;  %s383_s1 = inlined_call_operand.vmem [shape: bf16[32,128], index: 1, kind: input, shape index: {}]   ;;  %s384_s2 = inlined_call_operand.vmem [shape: f32[1,128], index: 2, kind: input, shape index: {}]   ;;  %s385_s3 = inlined_call_operand.vmem [shape: bf16[128,128], index: 3, kind: input, shape index: {}]   ;;  %s386_s4 = inlined_call_operand.vmem [shape: f32[1,128], index: 4, kind: input, shape index: {}]   ;;  %s387_s5 = inlined_call_operand.hbm [shape: f32[8,128], index: 5, kind: output, shape index: {}]  }
   0x1   :  { %v275_v0 = vld [vmem:[%s383_s1 + $0x8] sm:$0xff]   ;;  %244 = vmatprep.subr.bf16.mxu0 %v307_v1  ;;  %252 = vmatprep.subr.bf16.mxu1 %v307_v1  ;;  %v276_v2 = vld [vmem:[%s383_s1] sm:$0xff]   ;;  %v277_v3 = vld [vmem:[%s385_s3 + $0x38] sm:$0xff]  }
   0x2   :  { %245 = vmatpush3.bf16.msra.mxu0 %v275_v0  ;;  %248 = vmatprep.mubr.msk.bf16.mxu0 %vm308_vm0, %v307_v1  ;;  %v278_v4 = vld [vmem:[%s385_s3 + $0x30] sm:$0xff]   ;;  %v22_v5 = vld [vmem:[%s382_s0] sm:$0xf]  ;;  %v279_v6 = vld [vmem:[%s385_s3 + $0x28] sm:$0xff]  }
   0x3   :  { %246 = vmatprep.subr.bf16.mxu0 %v307_v1  ;;  %268 = vmatprep.mubr.msk.bf16.mxu1 %vm308_vm0, %v307_v1 }
   0x4   :  { %253 = vmatpush3.bf16.msra.mxu1 %v277_v3 }
   0x5   :  { %254 = vmatprep.subr.bf16.mxu1 %v307_v1 }
   0x6   :  { %247 = vmatpush3.bf16.msra.mxu0 %v276_v2 }
   0x8   :  { %255 = vmatpush3.bf16.msra.mxu1 %v278_v4 }
   0x9   :  { %249 = vmatmul.mubr.msk.bf16.vlgmr.msra.gmra.mxu0 %vm46_vm1, %v22_v5  ;;  %256 = vmatprep.subr.bf16.mxu1 %v307_v1 }
   0xa   :  { %10 = vsyncpa [#allocation3], 0  ;;  %v280_v7 = vld [vmem:[%s385_s3 + $0x20] sm:$0xff]   ;;  %v281_v8 = vld [vmem:[%s385_s3 + $0x18] sm:$0xff]   ;;  %s309_s17 = smov [#allocation2]  }
   0xb   :  { %v282_v9 = vld [vmem:[%s385_s3 + $0x10] sm:$0xff]   ;;  %v283_v10 = vld [vmem:[%s385_s3 + $0x8] sm:$0xff]   ;;  %v284_v11 = vld [vmem:[%s385_s3] sm:$0xff]   ;;  %s211_s3 = sshll.u32 %s309_s17, 4  ;;  %s212_s3 = int_to_ptr.vmem [resolvable:$true] %s211_s3 }
   0xc   :  { %257 = vmatpush3.bf16.msra.mxu1 %v279_v6  ;;  %v219_v12 = vld [vmem:[%s384_s2] ss:$0 sm:$0xff]  ;;  %s285_s2 = scalar_lea.vmem %s212_s3, 128  ;;  %p290_p1 = scmp.lt.s32.totalorder %s212_s3, %s212_s3 }
   0xd   :  { %258 = vmatprep.subr.bf16.mxu1 %v307_v1  ;;  %v223_v20 = vld [vmem:[%s386_s4] ss:$0 sm:$0xff]  ;;  %p286_p0 = scmp.ne.s32.totalorder %s212_s3, %s285_s2  ;;  %p291_p2 = scmp.lt.s32.totalorder %s285_s2, %s285_s2 }
   0xf   :  { %p292_p3 = por %p291_p2, %p290_p1 }
  0x10   :  { %259 = vmatpush3.bf16.msra.mxu1 %v280_v7 }
  0x11   :  { %260 = vmatprep.subr.bf16.mxu1 %v307_v1  ;;  %p293_p4 = pnand %p292_p3, %p286_p0 }
  0x14   :  { %261 = vmatpush3.bf16.msra.mxu1 %v281_v8 }
  0x15   :  { %262 = vmatprep.subr.bf16.mxu1 %v307_v1 }
  0x18   :  { %263 = vmatpush3.bf16.msra.mxu1 %v282_v9 }
  0x19   :  { %264 = vmatprep.subr.bf16.mxu1 %v307_v1 }
  0x1c   :  { %265 = vmatpush3.bf16.msra.mxu1 %v283_v10 }
  0x1d   :  { %266 = vmatprep.subr.bf16.mxu1 %v307_v1 }
  0x20   :  { %267 = vmatpush3.bf16.msra.mxu1 %v284_v11 }
  0xc9   :  { %v84_v13 = vpop.f32.mrf.mxu0 }
  0xca   :  { %v85_v14 = vadd.f32 %v219_v12, %v84_v13 }
  0xcb   :  { %v250_v15 = vpop.f32.mrf.mxu0 }
  0xcc   :  { %v90_v16 = vmax.f32 %v85_v14, 0.0 }
  0xcd   :  { %v87_v17 = vpop.f32.mrf.mxu0 }
  0xce   :  { %v91_v18 = vpack.c.bf16 %v90_v16, %v90_v16 }
  0xcf   :  { %v251_v19 = vpop.f32.mrf.mxu0 }
  0xd0   :  { %269 = vmatmul.mubr.bf16.vlgmr.msra.gmra.mxu1 %v91_v18 }
 0x190   :  { %v197_v21 = vpop.f32.mrf.mxu1 }
 0x191   :  { %v198_v22 = vadd.f32 %v223_v20, %v197_v21 }
 0x192   :  { %v270_v23 = vpop.f32.mrf.mxu1 }
 0x193   :  { %v203_v24 = vmax.f32 %v198_v22, 0.0 }
 0x194   :  { %v200_v25 = vpop.f32.mrf.mxu1 }
 0x195   :  { %204 = vst [vmem:[#allocation2] sm:$0xff] %v203_v24 }
 0x196   :  { %v271_v26 = vpop.f32.mrf.mxu1 }
 0x197   :  { %296 = shalt.err (!%p293_p4)
}
 0x198   :  { %214 = dma.vmem_to_hbm [thread:$0]  %s212_s3, 128, %s387_s5, [#allocation3]  }
 0x199   :  { %305 = dma.done.wait [#allocation3], 128  }
 0x19a   :  { %306 = vsyncadd [#allocation3], 4294967168 }
 0x19b   :  { %218 = vsyncpa [#allocation3], 1 }

</bundles_post_ra>
